<compile_context>
chip_gen: v6e
topology: v6e:2x2x1
jax: 0.10.0
libtpu: 0.0.40
codegen_flags: <defaults>
</compile_context>

<pallas_src>
import jax
import jax.numpy as jnp
from jax.experimental import pallas as pl
from jax.experimental.pallas import tpu as pltpu

EPS = 1e-5  # nn.LayerNorm default eps

# On v6e / v7x this can be set to jnp.bfloat16 to run the MXU in bf16
# (accumulation stays f32 via preferred_element_type). Keep f32 on v5e
# (no bf16 VPU/EUP) and for bit-tight comparison against the f32 reference.
MATMUL_DTYPE = jnp.float32


# ----------------------------- Pallas kernel ------------------------------ #

def vp_kernel(x_ref, mask_ref, tpos_ref,
              w1_ref, b1_ref, g1_ref, be1_ref,
              w2_ref, b2_ref, gw_ref, consts_ref,
              out_ref):
    B, T = out_ref.shape
    BT = x_ref.shape[0]

    # Halo-row masks shared by both convs: first / last row of each original
    # batch element inside the flattened (BT, .) layout. tpos = row % T is
    # precomputed on the host (avoids in-kernel integer remainder).
    tpos = tpos_ref[...]                       # (BT, 1) int32
    is_first = tpos == 0                       # x[b, 0]   -> x_prev must be 0
    is_last = tpos == (T - 1)                  # x[b, T-1] -> x_next must be 0

    def conv3(h, w_cat_ref, b_row):
        # kernel_size=3, padding=1 conv as a single MXU matmul on
        # [h[t-1] | h[t] | h[t+1]] with zeroed halos at batch boundaries.
        # h: (BT, C) f32, w_cat_ref: (3C, Cout) tap-stacked, b_row: (1, Cout).
        h_prev = jnp.where(is_first, 0.0, pltpu.roll(h, 1, 0))       # h[t-1]
        h_next = jnp.where(is_last, 0.0, pltpu.roll(h, BT - 1, 0))   # h[t+1]
        h_cat = jnp.concatenate([h_prev, h, h_next], axis=-1)        # (BT, 3C)
        y = jnp.dot(h_cat.astype(w_cat_ref.dtype), w_cat_ref[...],
                    preferred_element_type=jnp.float32)
        return y + b_row

    x = x_ref[...]                                                   # (BT, H)

    # conv1d_1 -> relu_1 -> layer_norm_1   (dropout_1 = identity in eval mode)
    h = conv3(x, w1_ref, b1_ref[...])                                # (BT, F)
    h = jnp.maximum(h, 0.0)
    mu = jnp.mean(h, axis=-1, keepdims=True)
    var = jnp.mean(jnp.square(h - mu), axis=-1, keepdims=True)
    h = (h - mu) * jax.lax.rsqrt(var + EPS) * g1_ref[...] + be1_ref[...]

    # conv1d_2 -> relu_2                   (dropout_2 = identity in eval mode)
    h = conv3(h, w2_ref, b2_ref[...])                                # (BT, F)
    h = jnp.maximum(h, 0.0)

    # layer_norm_2 + Linear(F, 1) folded; computed lane-dense as (B, T).
    #   y = rsqrt(var) * (sum_f h*gw - mu*sum(gw)) + (be2 . wll + bll)
    h3 = h.reshape(B, T, h.shape[-1])          # row-dim split only (layout-safe)
    gw = gw_ref[...]                           # (1, F) = gamma2 * W_ll
    gw_sum = consts_ref[0]                     # sum(gamma2 * W_ll)
    c_out = consts_ref[1]                      # dot(beta2, W_ll) + b_ll
    m1 = jnp.mean(h3, axis=-1)                 # (B, T)
    m2 = jnp.mean(h3 * h3, axis=-1)            # (B, T)
    s = jnp.sum(h3 * gw, axis=-1)              # (B, T)
    var2 = m2 - m1 * m1
    y = (s - m1 * gw_sum) * jax.lax.rsqrt(var2 + EPS) + c_out        # (B, T)

    # masked_fill(mask, 0.0) with a lane-dense mask.
    out_ref[...] = jnp.where(mask_ref[...] != 0, 0.0, y)


def variance_predictor(x, mask, params):
    """x: (B, T, H) f32, mask: (B, T) bool/int (True = masked) -> (B, T) f32."""
    B, T, H = x.shape
    Fs = params["g1"].shape[-1]
    BT = B * T

    # Host-side parameter prep:
    #   * conv taps stacked along the contraction dim -> one MXU pass per conv
    #   * LayerNorm2 + Linear(F,1) folded into one row vector and two scalars.
    w1_cat = params["w1"].reshape(3 * H, Fs).astype(MATMUL_DTYPE)    # (3H, F)
    w2_cat = params["w2"].reshape(3 * Fs, Fs).astype(MATMUL_DTYPE)   # (3F, F)
    gw = (params["g2"] * params["wll"]).astype(jnp.float32)          # (1, F)
    consts = jnp.stack([
        jnp.sum(gw),
        jnp.sum(params["be2"] * params["wll"]) + params["bll"][0, 0],
    ]).astype(jnp.float32)                                           # (2,)

    x2d = x.reshape(BT, H).astype(jnp.float32)                       # (BT, H)
    mask_i32 = mask.astype(jnp.int32)                                # (B, T)
    tpos = (jnp.arange(BT, dtype=jnp.int32) % T).reshape(BT, 1)      # (BT, 1)

    vmem = pl.BlockSpec(memory_space=pltpu.MemorySpace.VMEM)
    smem = pl.BlockSpec(memory_space=pltpu.MemorySpace.SMEM)

    # Everything fits comfortably in VMEM at these shapes, so the kernel runs
    # as a single invocation (no grid).
    # TODO(synk): for long sequences (or v7x's 64 MiB VMEM), tile the BT rows
    # with a grid + 1-row halos and mark the row axis "parallel" for megacore.
    return pl.pallas_call(
        vp_kernel,
        out_shape=jax.ShapeDtypeStruct((B, T), jnp.float32),
        in_specs=[vmem, vmem, vmem,            # x2d, mask, tpos
                  vmem, vmem, vmem, vmem,      # w1_cat, b1, gamma1, beta1
                  vmem, vmem, vmem,            # w2_cat, b2, gamma2*W_ll
                  smem],                       # folded scalars [sum(gw), c]
        out_specs=vmem,
    )(x2d, mask_i32, tpos,
      w1_cat, params["b1"], params["g1"], params["be1"],
      w2_cat, params["b2"], gw, consts)


# --------------------------- pure-JAX reference ---------------------------- #

def ref_forward(x, mask_bool, p):
    # Convert tap-major weights (K, Cin, Cout) back to PyTorch OIK layout.
    W1 = jnp.transpose(p["w1"], (2, 1, 0))   # (F, H, 3)
    W2 = jnp.transpose(p["w2"], (2, 1, 0))   # (F, F, 3)

    def conv1d(h, W, b):
        out = jax.lax.conv_general_dilated(
            jnp.transpose(h, (0, 2, 1)), W, (1,), [(1, 1)],
            dimension_numbers=("NCH", "OIH", "NCH"))
        return jnp.transpose(out, (0, 2, 1)) + b[0]

    def ln(h, g, be):
        mu = jnp.mean(h, axis=-1, keepdims=True)
        var = jnp.mean((h - mu) ** 2, axis=-1, keepdims=True)
        return (h - mu) / jnp.sqrt(var + EPS) * g[0] + be[0]

    h = ln(jax.nn.relu(conv1d(x, W1, p["b1"])), p["g1"], p["be1"])
    h = ln(jax.nn.relu(conv1d(h, W2, p["b2"])), p["g2"], p["be2"])
    y = jnp.einsum("btf,f->bt", h, p["wll"][0]) + p["bll"][0, 0]
    return jnp.where(mask_bool, 0.0, y)


# --------------------------------- main ------------------------------------ #

if __name__ == "__main__":
    B, T, H, Fs, K = 2, 8, 32, 32, 3   # encoder_hidden=32, filter_size=32, kernel=3

    key = jax.random.PRNGKey(0)
    ks = jax.random.split(key, 10)

    # Deterministic synthetic parameters (not loaded from a checkpoint).
    params = {
        # conv weights stored tap-major: (K, Cin, Cout); tap k multiplies x[t+k-1]
        "w1": 0.1 * jax.random.normal(ks[0], (K, H, Fs), jnp.float32),
        "b1": 0.1 * jax.random.normal(ks[1], (1, Fs), jnp.float32),
        "g1": 1.0 + 0.1 * jax.random.normal(ks[2], (1, Fs), jnp.float32),
        "be1": 0.1 * jax.random.normal(ks[3], (1, Fs), jnp.float32),
        "w2": 0.1 * jax.random.normal(ks[4], (K, Fs, Fs), jnp.float32),
        "b2": 0.1 * jax.random.normal(ks[5], (1, Fs), jnp.float32),
        "g2": 1.0 + 0.1 * jax.random.normal(ks[6], (1, Fs), jnp.float32),
        "be2": 0.1 * jax.random.normal(ks[7], (1, Fs), jnp.float32),
        "wll": 0.1 * jax.random.normal(ks[8], (1, Fs), jnp.float32),
        "bll": 0.1 * jax.random.normal(ks[9], (1, 1), jnp.float32),
    }

    xkey, _ = jax.random.split(key)
    x = jax.random.normal(xkey, (B, T, H), jnp.float32)

    # Padding mask: True where the position is padding (masked to 0.0).
    lengths = jnp.array([T, 5], dtype=jnp.int32)
    mask_bool = jnp.arange(T)[None, :] >= lengths[:, None]          # (B, T) bool

    out = variance_predictor(x, mask_bool, params)
    out = jax.block_until_ready(out)

    ref = ref_forward(x, mask_bool, params)
    assert out.shape == (B, T)
    assert jnp.allclose(out, ref, atol=1e-4, rtol=1e-4), (
        f"max err {jnp.max(jnp.abs(out - ref))}")

    print("KERNEL_OK")
</pallas_src>

<mosaic_0001>
module attributes {stable_mosaic.version = 11 : i64} {
  func.func @vp_kernel(%arg0: memref<16x32xf32, #tpu.memory_space<vmem>>, %arg1: memref<2x8xi32, #tpu.memory_space<vmem>>, %arg2: memref<16x1xi32, #tpu.memory_space<vmem>>, %arg3: memref<96x32xf32, #tpu.memory_space<vmem>>, %arg4: memref<1x32xf32, #tpu.memory_space<vmem>>, %arg5: memref<1x32xf32, #tpu.memory_space<vmem>>, %arg6: memref<1x32xf32, #tpu.memory_space<vmem>>, %arg7: memref<96x32xf32, #tpu.memory_space<vmem>>, %arg8: memref<1x32xf32, #tpu.memory_space<vmem>>, %arg9: memref<1x32xf32, #tpu.memory_space<vmem>>, %arg10: memref<2xf32, #tpu.memory_space<smem>>, %arg11: memref<2x8xf32, #tpu.memory_space<vmem>>) attributes {dimension_semantics = [], scalar_prefetch = 0 : i64, scratch_operands = 0 : i64, tpu.core_type = #tpu.core_type<tc>} {
    %c0 = arith.constant 0 : index
    %c0_0 = arith.constant 0 : index
    %0 = vector.load %arg2[%c0, %c0_0] : memref<16x1xi32, #tpu.memory_space<vmem>>, vector<16x1xi32>
    %c0_i32 = arith.constant 0 : i32
    %1 = vector.broadcast %c0_i32 : i32 to vector<16x1xi32>
    %2 = arith.cmpi eq, %0, %1 : vector<16x1xi32>
    %c7_i32 = arith.constant 7 : i32
    %3 = vector.broadcast %c7_i32 : i32 to vector<16x1xi32>
    %4 = arith.cmpi eq, %0, %3 : vector<16x1xi32>
    %c0_1 = arith.constant 0 : index
    %c0_2 = arith.constant 0 : index
    %5 = vector.load %arg0[%c0_1, %c0_2] : memref<16x32xf32, #tpu.memory_space<vmem>>, vector<16x32xf32>
    %c0_3 = arith.constant 0 : index
    %c0_4 = arith.constant 0 : index
    %6 = vector.load %arg4[%c0_3, %c0_4] : memref<1x32xf32, #tpu.memory_space<vmem>>, vector<1x32xf32>
    %c1_i32 = arith.constant 1 : i32
    %7 = tpu.dynamic_rotate %5 by %c1_i32 dim 0 : vector<16x32xf32>, i32 -> vector<16x32xf32>
    %cst = arith.constant 0.000000e+00 : f32
    %8 = vector.shape_cast %2 : vector<16x1xi1> to vector<16x1xi1>
    %9 = vector.broadcast %8 : vector<16x1xi1> to vector<16x32xi1>
    %10 = vector.broadcast %cst : f32 to vector<16x32xf32>
    %11 = arith.select %9, %10, %7 : vector<16x32xi1>, vector<16x32xf32>
    %c15_i32 = arith.constant 15 : i32
    %12 = tpu.dynamic_rotate %5 by %c15_i32 dim 0 : vector<16x32xf32>, i32 -> vector<16x32xf32>
    %cst_5 = arith.constant 0.000000e+00 : f32
    %13 = vector.shape_cast %4 : vector<16x1xi1> to vector<16x1xi1>
    %14 = vector.broadcast %13 : vector<16x1xi1> to vector<16x32xi1>
    %15 = vector.broadcast %cst_5 : f32 to vector<16x32xf32>
    %16 = arith.select %14, %15, %12 : vector<16x32xi1>, vector<16x32xf32>
    %17 = tpu.concatenate %11, %5, %16 in 1 : vector<16x32xf32>, vector<16x32xf32>, vector<16x32xf32> -> vector<16x96xf32>
    %c0_6 = arith.constant 0 : index
    %c0_7 = arith.constant 0 : index
    %18 = vector.load %arg3[%c0_6, %c0_7] : memref<96x32xf32, #tpu.memory_space<vmem>>, vector<96x32xf32>
    %cst_8 = arith.constant dense<0.000000e+00> : vector<16x32xf32>
    %19 = tpu.matmul %17, %18, %cst_8 {dimension_numbers = #tpu.dot_dimension_numbers<[1], [0], [0], [1], [0, 0, 1, 1], [], []>} : vector<16x96xf32>, vector<96x32xf32>, vector<16x32xf32> -> vector<16x32xf32>
    %20 = vector.broadcast %6 : vector<1x32xf32> to vector<16x32xf32>
    %21 = arith.addf %19, %20 : vector<16x32xf32>
    %cst_9 = arith.constant 0.000000e+00 : f32
    %22 = vector.broadcast %cst_9 : f32 to vector<16x32xf32>
    %23 = arith.maximumf %21, %22 : vector<16x32xf32>
    %cst_10 = arith.constant dense<0.000000e+00> : vector<16xf32>
    %24 = vector.multi_reduction <add>, %23, %cst_10 [1] : vector<16x32xf32> to vector<16xf32>
    %25 = vector.shape_cast %24 : vector<16xf32> to vector<16x1xf32>
    %cst_11 = arith.constant 3.200000e+01 : f32
    %26 = vector.broadcast %cst_11 : f32 to vector<16x1xf32>
    %27 = arith.divf %25, %26 : vector<16x1xf32>
    %28 = vector.broadcast %27 : vector<16x1xf32> to vector<16x32xf32>
    %29 = arith.subf %23, %28 : vector<16x32xf32>
    %30 = arith.mulf %29, %29 : vector<16x32xf32>
    %cst_12 = arith.constant dense<0.000000e+00> : vector<16xf32>
    %31 = vector.multi_reduction <add>, %30, %cst_12 [1] : vector<16x32xf32> to vector<16xf32>
    %32 = vector.shape_cast %31 : vector<16xf32> to vector<16x1xf32>
    %cst_13 = arith.constant 3.200000e+01 : f32
    %33 = vector.broadcast %cst_13 : f32 to vector<16x1xf32>
    %34 = arith.divf %32, %33 : vector<16x1xf32>
    %35 = vector.broadcast %27 : vector<16x1xf32> to vector<16x32xf32>
    %36 = arith.subf %23, %35 : vector<16x32xf32>
    %cst_14 = arith.constant 9.99999974E-6 : f32
    %37 = vector.broadcast %cst_14 : f32 to vector<16x1xf32>
    %38 = arith.addf %34, %37 : vector<16x1xf32>
    %39 = math.rsqrt %38 : vector<16x1xf32>
    %40 = vector.broadcast %39 : vector<16x1xf32> to vector<16x32xf32>
    %41 = arith.mulf %36, %40 : vector<16x32xf32>
    %c0_15 = arith.constant 0 : index
    %c0_16 = arith.constant 0 : index
    %42 = vector.load %arg5[%c0_15, %c0_16] : memref<1x32xf32, #tpu.memory_space<vmem>>, vector<1x32xf32>
    %43 = vector.broadcast %42 : vector<1x32xf32> to vector<16x32xf32>
    %44 = arith.mulf %41, %43 : vector<16x32xf32>
    %c0_17 = arith.constant 0 : index
    %c0_18 = arith.constant 0 : index
    %45 = vector.load %arg6[%c0_17, %c0_18] : memref<1x32xf32, #tpu.memory_space<vmem>>, vector<1x32xf32>
    %46 = vector.broadcast %45 : vector<1x32xf32> to vector<16x32xf32>
    %47 = arith.addf %44, %46 : vector<16x32xf32>
    %c0_19 = arith.constant 0 : index
    %c0_20 = arith.constant 0 : index
    %48 = vector.load %arg8[%c0_19, %c0_20] : memref<1x32xf32, #tpu.memory_space<vmem>>, vector<1x32xf32>
    %c1_i32_21 = arith.constant 1 : i32
    %49 = tpu.dynamic_rotate %47 by %c1_i32_21 dim 0 : vector<16x32xf32>, i32 -> vector<16x32xf32>
    %cst_22 = arith.constant 0.000000e+00 : f32
    %50 = vector.shape_cast %2 : vector<16x1xi1> to vector<16x1xi1>
    %51 = vector.broadcast %50 : vector<16x1xi1> to vector<16x32xi1>
    %52 = vector.broadcast %cst_22 : f32 to vector<16x32xf32>
    %53 = arith.select %51, %52, %49 : vector<16x32xi1>, vector<16x32xf32>
    %c15_i32_23 = arith.constant 15 : i32
    %54 = tpu.dynamic_rotate %47 by %c15_i32_23 dim 0 : vector<16x32xf32>, i32 -> vector<16x32xf32>
    %cst_24 = arith.constant 0.000000e+00 : f32
    %55 = vector.shape_cast %4 : vector<16x1xi1> to vector<16x1xi1>
    %56 = vector.broadcast %55 : vector<16x1xi1> to vector<16x32xi1>
    %57 = vector.broadcast %cst_24 : f32 to vector<16x32xf32>
    %58 = arith.select %56, %57, %54 : vector<16x32xi1>, vector<16x32xf32>
    %59 = tpu.concatenate %53, %47, %58 in 1 : vector<16x32xf32>, vector<16x32xf32>, vector<16x32xf32> -> vector<16x96xf32>
    %c0_25 = arith.constant 0 : index
    %c0_26 = arith.constant 0 : index
    %60 = vector.load %arg7[%c0_25, %c0_26] : memref<96x32xf32, #tpu.memory_space<vmem>>, vector<96x32xf32>
    %cst_27 = arith.constant dense<0.000000e+00> : vector<16x32xf32>
    %61 = tpu.matmul %59, %60, %cst_27 {dimension_numbers = #tpu.dot_dimension_numbers<[1], [0], [0], [1], [0, 0, 1, 1], [], []>} : vector<16x96xf32>, vector<96x32xf32>, vector<16x32xf32> -> vector<16x32xf32>
    %62 = vector.broadcast %48 : vector<1x32xf32> to vector<16x32xf32>
    %63 = arith.addf %61, %62 : vector<16x32xf32>
    %cst_28 = arith.constant 0.000000e+00 : f32
    %64 = vector.broadcast %cst_28 : f32 to vector<16x32xf32>
    %65 = arith.maximumf %63, %64 : vector<16x32xf32>
    %66 = vector.shape_cast %65 : vector<16x32xf32> to vector<2x8x32xf32>
    %c0_29 = arith.constant 0 : index
    %c0_30 = arith.constant 0 : index
    %67 = vector.load %arg9[%c0_29, %c0_30] : memref<1x32xf32, #tpu.memory_space<vmem>>, vector<1x32xf32>
    %c0_31 = arith.constant 0 : index
    %68 = memref.load %arg10[%c0_31] : memref<2xf32, #tpu.memory_space<smem>>
    %c1 = arith.constant 1 : index
    %69 = memref.load %arg10[%c1] : memref<2xf32, #tpu.memory_space<smem>>
    %cst_32 = arith.constant dense<0.000000e+00> : vector<2x8xf32>
    %70 = vector.multi_reduction <add>, %66, %cst_32 [2] : vector<2x8x32xf32> to vector<2x8xf32>
    %cst_33 = arith.constant 3.200000e+01 : f32
    %71 = vector.broadcast %cst_33 : f32 to vector<2x8xf32>
    %72 = arith.divf %70, %71 : vector<2x8xf32>
    %73 = arith.mulf %66, %66 : vector<2x8x32xf32>
    %cst_34 = arith.constant dense<0.000000e+00> : vector<2x8xf32>
    %74 = vector.multi_reduction <add>, %73, %cst_34 [2] : vector<2x8x32xf32> to vector<2x8xf32>
    %cst_35 = arith.constant 3.200000e+01 : f32
    %75 = vector.broadcast %cst_35 : f32 to vector<2x8xf32>
    %76 = arith.divf %74, %75 : vector<2x8xf32>
    %77 = vector.shape_cast %67 : vector<1x32xf32> to vector<1x1x32xf32>
    %78 = vector.broadcast %77 : vector<1x1x32xf32> to vector<2x8x32xf32>
    %79 = arith.mulf %66, %78 : vector<2x8x32xf32>
    %cst_36 = arith.constant dense<0.000000e+00> : vector<2x8xf32>
    %80 = vector.multi_reduction <add>, %79, %cst_36 [2] : vector<2x8x32xf32> to vector<2x8xf32>
    %81 = arith.mulf %72, %72 : vector<2x8xf32>
    %82 = arith.subf %76, %81 : vector<2x8xf32>
    %83 = vector.broadcast %68 : f32 to vector<2x8xf32>
    %84 = arith.mulf %72, %83 : vector<2x8xf32>
    %85 = arith.subf %80, %84 : vector<2x8xf32>
    %cst_37 = arith.constant 9.99999974E-6 : f32
    %86 = vector.broadcast %cst_37 : f32 to vector<2x8xf32>
    %87 = arith.addf %82, %86 : vector<2x8xf32>
    %88 = math.rsqrt %87 : vector<2x8xf32>
    %89 = arith.mulf %85, %88 : vector<2x8xf32>
    %90 = vector.broadcast %69 : f32 to vector<2x8xf32>
    %91 = arith.addf %89, %90 : vector<2x8xf32>
    %c0_38 = arith.constant 0 : index
    %c0_39 = arith.constant 0 : index
    %92 = vector.load %arg1[%c0_38, %c0_39] : memref<2x8xi32, #tpu.memory_space<vmem>>, vector<2x8xi32>
    %c0_i32_40 = arith.constant 0 : i32
    %93 = vector.broadcast %c0_i32_40 : i32 to vector<2x8xi32>
    %94 = arith.cmpi ne, %92, %93 : vector<2x8xi32>
    %cst_41 = arith.constant 0.000000e+00 : f32
    %95 = vector.broadcast %cst_41 : f32 to vector<2x8xf32>
    %96 = arith.select %94, %95, %91 : vector<2x8xi1>, vector<2x8xf32>
    %c0_42 = arith.constant 0 : index
    %c0_43 = arith.constant 0 : index
    %97 = vector.load %arg11[%c0_42, %c0_43] : memref<2x8xf32, #tpu.memory_space<vmem>>, vector<2x8xf32>
    tpu.vector_store %arg11[%c0_42, %c0_43], %96 {strides = array<i32>} : memref<2x8xf32, #tpu.memory_space<vmem>>, vector<2x8xf32>,
    return
  }
}

</mosaic_0001>

<bundles_post_ra>
// kernel: tpu_custom_call.1
= control target key start
LH: loop header
LB: loop body
LE: loop exit
PB: predicated region body
PF: predicated region fallthrough
CT: control target
= control target key end

     0   :  { %16 = vsyncpa [#allocation4], 0  ;;  %s885_s0 = inlined_call_operand.vmem [shape: f32[16,32], index: 0, kind: input, shape index: {}]   ;;  %s886_s1 = inlined_call_operand.vmem [shape: s32[2,8], index: 1, kind: input, shape index: {}]   ;;  %s887_s2 = inlined_call_operand.vmem [shape: s32[16,1], index: 2, kind: input, shape index: {}]   ;;  %s888_s3 = inlined_call_operand.vmem [shape: f32[96,32], index: 3, kind: input, shape index: {}]   ;;  %s889_s4 = inlined_call_operand.vmem [shape: f32[1,32], index: 4, kind: input, shape index: {}]   ;;  %s890_s5 = inlined_call_operand.vmem [shape: f32[1,32], index: 5, kind: input, shape index: {}]   ;;  %s891_s6 = inlined_call_operand.vmem [shape: f32[1,32], index: 6, kind: input, shape index: {}]   ;;  %s892_s7 = inlined_call_operand.vmem [shape: f32[96,32], index: 7, kind: input, shape index: {}]   ;;  %s893_s8 = inlined_call_operand.vmem [shape: f32[1,32], index: 8, kind: input, shape index: {}]   ;;  %s894_s9 = inlined_call_operand.vmem [shape: f32[1,32], index: 9, kind: input, shape index: {}]   ;;  %s895_s10 = inlined_call_operand.vmem [shape: f32[2], index: 10, kind: input, shape index: {}]   ;;  %s896_s11 = inlined_call_operand.hbm [shape: f32[2,8], index: 11, kind: output, shape index: {}]  }
   0x1   :  { %17 = vsyncpa [#allocation3], 0  ;;  %s44_s19 = sshll.u32 %s895_s10, 4  ;;  %s45_s19 = int_to_ptr.vmem [resolvable:$true] %s44_s19 }
   0x2   :  { %s595_s20 = scalar_lea.vmem %s45_s19, 16  ;;  %p600_p1 = scmp.lt.s32.totalorder %s45_s19, %s45_s19 }
   0x3   :  { %p596_p0 = scmp.ne.s32.totalorder %s45_s19, %s595_s20  ;;  %p601_p2 = scmp.lt.s32.totalorder %s595_s20, %s595_s20 }
   0x5   :  { %p602_p3 = por %p601_p2, %p600_p1 }
   0x7   :  { %p603_p4 = pnand %p602_p3, %p596_p0 }
   0x9   :  { %606 = shalt.err (!%p603_p4)
}
   0xa   :  { %s631_s21 = smov [#allocation2]  }
   0xb   :  { %47 = dma.vmem_to_smem %s45_s19, 16, %s631_s21, [#allocation4]  }
   0xc   :  { %627 = dma.done.wait [#allocation4], 16  }
   0xd   :  { %628 = vsyncadd [#allocation4], 4294967280 }
   0xe   :  { %51 = sfence }
   0xf   :  { %v52_v0 = vld [vmem:[%s887_s2] sm:$0xff]  ;;  %v53_v1 = vld [vmem:[%s887_s2 + $0x8] sm:$0xff]  ;;  %v63_v2 = vlaneseq  ;;  %v632_v3 = vmov 0   ;;  %v130_v15 = vld [vmem:[%s888_s3 + $0x58] sm:$0xff]  ;;  %s633_s14 = smov 32   ;;  %vm113_vm9 = vcmask 261120  }
  0x10   :  { %585 = vset.pattern.permute.xlu0 %v632_v3  ;;  %vm56_vm0 = vcmp.eq.s32.totalorder %v52_v0, 7  ;;  %vm57_vm1 = vcmp.eq.s32.totalorder %v53_v1, 7  ;;  %586 = vset.pattern.permute.xlu1 %v632_v3  ;;  %vm54_vm2 = vcmp.eq.s32.totalorder %v52_v0, 0  ;;  %vm55_vm3 = vcmp.eq.s32.totalorder %v53_v1, 0  ;;  %v58_v6 = vld [vmem:[%s885_s0] sm:$0xff]  ;;  %v59_v7 = vld [vmem:[%s885_s0 + $0x8] sm:$0xff] }
  0x11   :  { %v85_v4 = vsel %vm56_vm0, 1, %v632_v3  ;;  %v68_v5 = vsel %vm54_vm2, 1, %v632_v3  ;;  %v61_v8 = vrot.slane %v58_v6, 7  ;;  %v80_v9 = vrot.slane %v58_v6, 1  ;;  %526 = vmatprep.subr.mxu0 %v130_v15  ;;  %v129_v16 = vld [vmem:[%s888_s3 + $0x50] sm:$0xff]  ;;  %v128_v21 = vld [vmem:[%s888_s3 + $0x48] sm:$0xff] }
  0x12   :  { %88 = vperm.xlu0 %585, %v85_v4   ;;  %71 = vperm.xlu1 %586, %v68_v5   ;;  %v62_v10 = vrot.slane %v59_v7, 7  ;;  %v81_v11 = vrot.slane %v59_v7, 1  ;;  %v86_v12 = vsel %vm57_vm1, 1, %v632_v3  ;;  %v69_v13 = vsel %vm55_vm3, 1, %v632_v3  ;;  %v127_v22 = vld [vmem:[%s888_s3 + $0x40] sm:$0xff]  ;;  %v126_v23 = vld [vmem:[%s888_s3 + $0x38] sm:$0xff] }
  0x13   :  { %v712_v14 = vshrl.u32 %v63_v2, 7  ;;  %527 = vmatpush3.msra.mxu0 %v130_v15  ;;  %v125_v24 = vld [vmem:[%s888_s3 + $0x30] sm:$0xff]  ;;  %v124_v25 = vld [vmem:[%s888_s3 + $0x28] sm:$0xff]  ;;  %v123_v26 = vld [vmem:[%s888_s3 + $0x20] sm:$0xff]  ;;  %s634_s0 = smov 64   ;;  %vm116_vm11 = vcmask 523264  }
  0x14   :  { %528 = vmatprep.subr.mxu0 %v129_v16  ;;  %v122_v27 = vld [vmem:[%s888_s3 + $0x18] sm:$0xff]  ;;  %v121_v28 = vld [vmem:[%s888_s3 + $0x10] sm:$0xff]  ;;  %v120_v29 = vld [vmem:[%s888_s3 + $0x8] sm:$0xff]  ;;  %vm137_vm12 = vcmask 785408   ;;  %vm467_vm13 = vcmask 1041409   ;;  %s635_s20 = smov [#allocation5]  }
  0x15   :  { %vm82_vm4 = vcmp.lt.s32.totalorder %v712_v14, 7  ;;  %vm65_vm5 = vcmp.lt.s32.totalorder %v712_v14, 1  ;;  %529 = vmatpush3.msra.mxu0 %v129_v16  ;;  %v119_v30 = vld [vmem:[%s888_s3] sm:$0xff]  ;;  %v310_v3 = vld [vmem:[%s892_s7 + $0x58] sm:$0xff]  ;;  %v309_v4 = vld [vmem:[%s892_s7 + $0x50] sm:$0xff]  ;;  %s479_s21 = sshll.u32 %s635_s20, 4  ;;  %s480_s21 = int_to_ptr.vmem [resolvable:$true] %s479_s21 }
  0x16   :  { %91 = vperm.xlu0 %585, %v86_v12   ;;  %74 = vperm.xlu1 %586, %v69_v13   ;;  %v83_v17 = vsel %vm82_vm4, %v80_v9, %v81_v11  ;;  %v84_v18 = vsel %vm82_vm4, %v81_v11, %v80_v9  ;;  %v67_v19 = vsel %vm65_vm5, %v62_v10, %v61_v8  ;;  %v488_v47 = vld [vmem:[%s889_s4] ss:$0 sm:$0xff]  ;;  %v308_v5 = vld [vmem:[%s892_s7 + $0x48] sm:$0xff]  ;;  %vm471_vm15 = vcmask 58368   ;;  %s607_s22 = scalar_lea.vmem %s480_s21, 32  ;;  %p612_p6 = scmp.lt.s32.totalorder %s480_s21, %s480_s21 }
  0x17   :  { %v66_v20 = vsel %vm65_vm5, %v61_v8, %v62_v10  ;;  %530 = vmatprep.subr.mxu0 %v128_v21  ;;  %553 = vmatprep.subr.mxu1 %v310_v3  ;;  %v305_v8 = vld [vmem:[%s892_s7 + $0x30] sm:$0xff]  ;;  %v304_v16 = vld [vmem:[%s892_s7 + $0x28] sm:$0xff]  ;;  %p608_p5 = scmp.ne.s32.totalorder %s480_s21, %s607_s22  ;;  %p613_p7 = scmp.lt.s32.totalorder %s607_s22, %s607_s22 }
  0x18   :  { %531 = vmatpush3.msra.mxu0 %v128_v21  ;;  %554 = vmatpush3.msra.mxu1 %v310_v3  ;;  %v491_v21 = vld [vmem:[%s890_s5] ss:$0 sm:$0xff] }
  0x19   :  { %532 = vmatprep.subr.mxu0 %v127_v22  ;;  %555 = vmatprep.subr.mxu1 %v309_v4  ;;  %p614_p8 = por %p613_p7, %p612_p6 }
  0x1a   :  { %99 = vrot.lane.b32.xlu0 %v58_v6, %s633_s14  ;;  %101 = vrot.lane.b32.xlu1 %v59_v7, %s633_s14  ;;  %v307_v6 = vld [vmem:[%s892_s7 + $0x40] sm:$0xff]  ;;  %v306_v7 = vld [vmem:[%s892_s7 + $0x38] sm:$0xff] }
  0x1b   :  { %533 = vmatpush3.msra.mxu0 %v127_v22  ;;  %556 = vmatpush3.msra.mxu1 %v309_v4  ;;  %p615_p9 = pnand %p614_p8, %p608_p5 }
  0x1c   :  { %534 = vmatprep.subr.mxu0 %v126_v23  ;;  %557 = vmatprep.subr.mxu1 %v308_v5 }
  0x1d   :  { %535 = vmatpush3.msra.mxu0 %v126_v23  ;;  %558 = vmatpush3.msra.mxu1 %v308_v5  ;;  %v300_v23 = vld [vmem:[%s892_s7 + $0x8] sm:$0xff] }
  0x1e   :  { %536 = vmatprep.subr.mxu0 %v125_v24  ;;  %559 = vmatprep.subr.mxu1 %v307_v6 }
  0x1f   :  { %537 = vmatpush3.msra.mxu0 %v125_v24  ;;  %560 = vmatpush3.msra.mxu1 %v307_v6  ;;  %v492_v24 = vld [vmem:[%s891_s6] ss:$0 sm:$0xff] }
  0x20   :  { %538 = vmatprep.subr.mxu0 %v124_v25  ;;  %561 = vmatprep.subr.mxu1 %v306_v7 }
  0x21   :  { %539 = vmatpush3.msra.mxu0 %v124_v25  ;;  %562 = vmatpush3.msra.mxu1 %v306_v7 }
  0x22   :  { %540 = vmatprep.subr.mxu0 %v123_v26  ;;  %563 = vmatprep.subr.mxu1 %v305_v8 }
  0x23   :  { %541 = vmatpush3.msra.mxu0 %v123_v26  ;;  %564 = vmatpush3.msra.mxu1 %v305_v8  ;;  %v299_v26 = vld [vmem:[%s892_s7] sm:$0xff] }
  0x24   :  { %542 = vmatprep.subr.mxu0 %v122_v27  ;;  %565 = vmatprep.subr.mxu1 %v304_v16 }
  0x25   :  { %543 = vmatpush3.msra.mxu0 %v122_v27  ;;  %566 = vmatpush3.msra.mxu1 %v304_v16 }
  0x26   :  { %544 = vmatprep.subr.mxu0 %v121_v28 }
  0x27   :  { %545 = vmatpush3.msra.mxu0 %v121_v28 }
  0x28   :  { %546 = vmatprep.subr.mxu0 %v120_v29 }
  0x29   :  { %547 = vmatpush3.msra.mxu0 %v120_v29 }
  0x2a   :  { %548 = vmatprep.subr.mxu0 %v119_v30 }
  0x2b   :  { %549 = vmatpush3.msra.mxu0 %v119_v30 }
  0x8d   :  { %v762_v31 = vpop.permute.xlu0 %88  ;;  %v774_v35 = vpop.permute.xlu1 %71 }
  0x8e   :  { %vm93_vm6 = vcmp.eq.s32.totalorder %v762_v31, 1  ;;  %vm76_vm8 = vcmp.eq.s32.totalorder %v774_v35, 1  ;;  %v493_v35 = vld [vmem:[%s893_s8] ss:$0 sm:$0xff]  ;;  %s401_s8 = sld [smem:[#allocation2]] }
  0x8f   :  { %v95_v32 = vsel %vm93_vm6, 0.0, %v83_v17  ;;  %v78_v38 = vsel %vm76_vm8, 0.0, %v67_v19  ;;  %v303_v17 = vld [vmem:[%s892_s7 + $0x20] sm:$0xff]  ;;  %v301_v19 = vld [vmem:[%s892_s7 + $0x10] sm:$0xff] }
  0x90   :  { %107 = vrot.lane.b32.xlu0 %v95_v32, %s634_s0  ;;  %567 = vmatprep.subr.mxu1 %v303_v17 }
  0x91   :  { %v768_v33 = vpop.permute.xlu0 %91  ;;  %v777_v36 = vpop.permute.xlu1 %74  ;;  %568 = vmatpush3.msra.mxu1 %v303_v17 }
  0x92   :  { %vm94_vm7 = vcmp.eq.s32.totalorder %v768_v33, 1  ;;  %vm77_vm10 = vcmp.eq.s32.totalorder %v777_v36, 1 }
  0x93   :  { %v96_v34 = vsel %vm94_vm7, 0.0, %v84_v18  ;;  %v79_v42 = vsel %vm77_vm10, 0.0, %v66_v20  ;;  %v302_v18 = vld [vmem:[%s892_s7 + $0x18] sm:$0xff] }
  0x94   :  { %109 = vrot.lane.b32.xlu1 %v96_v34, %s634_s0  ;;  %569 = vmatprep.subr.mxu1 %v302_v18 }
  0x95   :  { %v100_v37 = vpop.permute.xlu0 %99  ;;  %v102_v40 = vpop.permute.xlu1 %101  ;;  %570 = vmatpush3.msra.mxu1 %v302_v18 }
  0x96   :  { %v114_v39 = vsel %vm113_vm9, %v78_v38, %v100_v37  ;;  %v115_v44 = vsel %vm113_vm9, %v79_v42, %v102_v40  ;;  %571 = vmatprep.subr.mxu1 %v301_v19 }
  0x97   :  { %572 = vmatpush3.msra.mxu1 %v301_v19 }
  0x98   :  { %573 = vmatprep.subr.mxu1 %v300_v23 }
  0x99   :  { %574 = vmatpush3.msra.mxu1 %v300_v23 }
  0x9a   :  { %575 = vmatprep.subr.mxu1 %v299_v26 }
  0x9b   :  { %576 = vmatpush3.msra.mxu1 %v299_v26 }
 0x102   :  { %v108_v41 = vpop.permute.xlu0 %107 }
 0x103   :  { %v117_v43 = vsel %vm116_vm11, %v114_v39, %v108_v41 }
 0x104   :  { %550 = vmatprep.mubr.msk.f32.mxu0 %vm137_vm12, %v117_v43 }
 0x106   :  { %v110_v45 = vpop.permute.xlu1 %109 }
 0x107   :  { %v118_v46 = vsel %vm116_vm11, %v115_v44, %v110_v45 }
 0x108   :  { %551 = vmatmul.mubr.msk.f32.vlgmr.msra.gmra.mxu0 %vm137_vm12, %v118_v46 }
 0x1c8   :  { %v552_v48 = vpop.f32.mrf.mxu0 }
 0x1c9   :  { %v216_v49 = vadd.f32 %v552_v48, %v488_v47 }
 0x1ca   :  { %v210_v50 = vpop.f32.mrf.mxu0 }
 0x1cb   :  { %v220_v51 = vmax.f32 %v216_v49, 0.0  ;;  %v211_v52 = vadd.f32 %v488_v47, %v210_v50 }
 0x1cd   :  { %v219_v53 = vmax.f32 %v211_v52, 0.0  ;;  %v224_v54 = vsel %vm113_vm9, %v220_v51, 0.0 }
 0x1ce   :  { %225 = vadd.xlane.f32.xlu1 %v224_v54 }
 0x1cf   :  { %v221_v55 = vsel %vm113_vm9, %v219_v53, 0.0 }
 0x1d0   :  { %222 = vadd.xlane.f32.xlu0 %v221_v55 }
 0x257   :  { %v226_v56 = vpop.xlane.xlu1 %225 }
 0x258   :  { %v229_v57 = vmul.f32 0.03125, %v226_v56 }
 0x259   :  { %v223_v58 = vpop.xlane.xlu0 %222 }
 0x25a   :  { %v228_v59 = vmul.f32 0.03125, %v223_v58  ;;  %v231_v60 = vsub.f32 %v220_v51, %v229_v57 }
 0x25c   :  { %v230_v61 = vsub.f32 %v219_v53, %v228_v59  ;;  %v233_v0 = vmul.f32 %v231_v60, %v231_v60 }
 0x25e   :  { %v232_v62 = vmul.f32 %v230_v61, %v230_v61  ;;  %v237_v1 = vsel %vm113_vm9, %v233_v0, 0.0 }
 0x260   :  { %v234_v63 = vsel %vm113_vm9, %v232_v62, 0.0 }
 0x261   :  { %235 = vadd.xlane.f32.xlu0 %v234_v63 }
 0x265   :  { %238 = vadd.xlane.f32.xlu0 %v237_v1 }
 0x2ea   :  { %v236_v9 = vpop.xlane.xlu0 %235 }
 0x2eb   :  { %v240_v10 = vmul.f32 0.03125, %v236_v9 }
 0x2ed   :  { %v242_v11 = vadd.f32 1e-05, %v240_v10 }
 0x2ee   :  { %v239_v12 = vpop.xlane.xlu0 %238 }
 0x2ef   :  { %587 = vrsqrt.f32 %v242_v11  ;;  %v241_v13 = vmul.f32 0.03125, %v239_v12 }
 0x2f1   :  { %v243_v15 = vadd.f32 1e-05, %v241_v13 }
 0x2f3   :  { %589 = vrsqrt.f32 %v243_v15 }
 0x2fc   :  { %v588_v20 = vpop.eup %587 }
 0x2fd   :  { %v246_v22 = vmul.f32 %v588_v20, %v230_v61 }
 0x2ff   :  { %v255_v25 = vmul.f32 %v491_v21, %v246_v22  ;;  %v439_v22 = vstv %s401_s8 }
 0x300   :  { %v590_v27 = vpop.eup %589 }
 0x301   :  { %v264_v28 = vadd.f32 %v492_v24, %v255_v25  ;;  %v247_v29 = vmul.f32 %v590_v27, %v231_v60  ;;  %v497_v60 = vld [vmem:[%s894_s9] ss:$0 sm:$0xff]  ;;  %s496_s9 = sld [smem:[#allocation2 + $0x1]] }
 0x303   :  { %281 = vrot.lane.b32.xlu1 %v264_v28, %s633_s14  ;;  %v256_v30 = vmul.f32 %v491_v21, %v247_v29  ;;  %v267_v34 = vrot.slane %v264_v28, 7  ;;  %v273_v38 = vrot.slane %v264_v28, 1 }
 0x305   :  { %v265_v32 = vadd.f32 %v492_v24, %v256_v30  ;;  %v458_v30 = vand.u32 127, %v63_v2 }
 0x307   :  { %283 = vrot.lane.b32.xlu0 %v265_v32, %s633_s14  ;;  %v268_v37 = vrot.slane %v265_v32, 7  ;;  %v274_v39 = vrot.slane %v265_v32, 1  ;;  %v450_v32 = vstv %s496_s9 }
 0x309   :  { %v275_v40 = vsel %vm82_vm4, %v273_v38, %v274_v39  ;;  %v270_v41 = vsel %vm65_vm5, %v268_v37, %v267_v34  ;;  %v269_v42 = vsel %vm65_vm5, %v267_v34, %v268_v37  ;;  %v276_v44 = vsel %vm82_vm4, %v274_v39, %v273_v38 }
 0x30a   :  { %v277_v43 = vsel %vm93_vm6, 0.0, %v275_v40  ;;  %v278_v45 = vsel %vm94_vm7, 0.0, %v276_v44  ;;  %v271_v47 = vsel %vm76_vm8, 0.0, %v270_v41  ;;  %v272_v51 = vsel %vm77_vm10, 0.0, %v269_v42  ;;  %v453_v41 = vld [vmem:[%s886_s1] sm:$0x3] }
 0x30b   :  { %289 = vrot.lane.b32.xlu1 %v277_v43, %s634_s0  ;;  %v461_v39 = vsub.s32 %v458_v30, %v712_v14  ;;  %vm454_vm14 = vcmp.ne.s32.totalorder %v453_v41, 0 }
 0x30f   :  { %291 = vrot.lane.b32.xlu1 %v278_v45, %s634_s0 }
 0x375   :  { %v282_v46 = vpop.permute.xlu1 %281 }
 0x376   :  { %v295_v48 = vsel %vm113_vm9, %v271_v47, %v282_v46 }
 0x379   :  { %v284_v50 = vpop.permute.xlu0 %283 }
 0x37a   :  { %v296_v33 = vsel %vm113_vm9, %v272_v51, %v284_v50 }
 0x37d   :  { %v290_v49 = vpop.permute.xlu1 %289 }
 0x37e   :  { %v297_v31 = vsel %vm116_vm11, %v295_v48, %v290_v49 }
 0x37f   :  { %577 = vmatprep.mubr.msk.f32.mxu1 %vm137_vm12, %v297_v31 }
 0x381   :  { %v292_v52 = vpop.permute.xlu1 %291 }
 0x382   :  { %v298_v53 = vsel %vm116_vm11, %v296_v33, %v292_v52 }
 0x383   :  { %578 = vmatmul.mubr.msk.f32.vlgmr.msra.gmra.mxu1 %vm137_vm12, %v298_v53 }
 0x443   :  { %v579_v54 = vpop.f32.mrf.mxu1 }
 0x444   :  { %v395_v55 = vadd.f32 %v579_v54, %v493_v35 }
 0x445   :  { %v389_v56 = vpop.f32.mrf.mxu1 }
 0x446   :  { %v399_v57 = vmax.f32 %v395_v55, 0.0  ;;  %v390_v58 = vadd.f32 %v493_v35, %v389_v56 }
 0x448   :  { %v398_v59 = vmax.f32 %v390_v58, 0.0  ;;  %v406_v36 = vsel %vm113_vm9, %v399_v57, 0.0  ;;  %v412_v3 = vmul.f32 %v399_v57, %v399_v57  ;;  %v428_v5 = vmul.f32 %v497_v60, %v399_v57 }
 0x449   :  { %407 = vadd.xlane.f32.xlu1 %v406_v36 }
 0x44a   :  { %v403_v61 = vsel %vm113_vm9, %v398_v59, 0.0  ;;  %v427_v62 = vmul.f32 %v497_v60, %v398_v59  ;;  %v411_v63 = vmul.f32 %v398_v59, %v398_v59  ;;  %v416_v4 = vsel %vm113_vm9, %v412_v3, 0.0 }
 0x44b   :  { %404 = vadd.xlane.f32.xlu0 %v403_v61  ;;  %v432_v6 = vsel %vm113_vm9, %v428_v5, 0.0 }
 0x44c   :  { %v429_v0 = vsel %vm113_vm9, %v427_v62, 0.0  ;;  %v413_v1 = vsel %vm113_vm9, %v411_v63, 0.0 }
 0x44d   :  { %430 = vadd.xlane.f32.xlu1 %v429_v0 }
 0x44f   :  { %414 = vadd.xlane.f32.xlu0 %v413_v1 }
 0x453   :  { %417 = vadd.xlane.f32.xlu0 %v416_v4 }
 0x457   :  { %433 = vadd.xlane.f32.xlu0 %v432_v6 }
 0x4d2   :  { %v408_v9 = vpop.xlane.xlu1 %407 }
 0x4d3   :  { %v410_v11 = vmul.f32 0.03125, %v408_v9 }
 0x4d4   :  { %v405_v7 = vpop.xlane.xlu0 %404 }
 0x4d5   :  { %v409_v8 = vmul.f32 0.03125, %v405_v7  ;;  %v436_v17 = vmul.f32 %v410_v11, %v410_v11  ;;  %v441_v28 = vmul.f32 %v439_v22, %v410_v11 }
 0x4d6   :  { %v431_v24 = vpop.xlane.xlu1 %430 }
 0x4d7   :  { %v435_v12 = vmul.f32 %v409_v8, %v409_v8  ;;  %v440_v23 = vmul.f32 %v439_v22, %v409_v8 }
 0x4d8   :  { %v415_v10 = vpop.xlane.xlu0 %414 }
 0x4d9   :  { %v419_v13 = vmul.f32 0.03125, %v415_v10  ;;  %v442_v25 = vsub.f32 %v431_v24, %v440_v23 }
 0x4db   :  { %v437_v15 = vsub.f32 %v419_v13, %v435_v12 }
 0x4dc   :  { %v418_v16 = vpop.xlane.xlu0 %417 }
 0x4dd   :  { %v444_v18 = vadd.f32 1e-05, %v437_v15  ;;  %v420_v19 = vmul.f32 0.03125, %v418_v16 }
 0x4df   :  { %591 = vrsqrt.f32 %v444_v18  ;;  %v438_v20 = vsub.f32 %v420_v19, %v436_v17 }
 0x4e0   :  { %v434_v27 = vpop.xlane.xlu0 %433 }
 0x4e1   :  { %v445_v21 = vadd.f32 1e-05, %v438_v20  ;;  %v443_v34 = vsub.f32 %v434_v27, %v441_v28 }
 0x4e3   :  { %593 = vrsqrt.f32 %v445_v21 }
 0x4ec   :  { %v592_v26 = vpop.eup %591 }
 0x4ed   :  { %v448_v29 = vmul.f32 %v592_v26, %v442_v25 }
 0x4ef   :  { %v451_v38 = vadd.f32 %v450_v32, %v448_v29 }
 0x4f0   :  { %v594_v37 = vpop.eup %593 }
 0x4f1   :  { %v449_v40 = vmul.f32 %v594_v37, %v443_v34  ;;  %v462_v44 = vrot.slane %v451_v38, %v461_v39 }
 0x4f3   :  { %v452_v42 = vadd.f32 %v450_v32, %v449_v40 }
 0x4f5   :  { %v466_v43 = vrot.slane %v452_v42, %v461_v39 }
 0x4f7   :  { %v468_v2 = vsel %vm467_vm13, %v466_v43, %v462_v44 }
 0x4f8   :  { %v470_v45 = vsel %vm454_vm14, 0.0, %v468_v2 }
 0x4f9   :  { %472 = vst.msk [vmem:[#allocation5] sm:$0x3] %vm471_vm15, %v470_v45 }
 0x4fa   :  { %618 = shalt.err (!%p615_p9)
}
 0x4fb   :  { %482 = dma.vmem_to_hbm [thread:$0]  %s480_s21, 32, %s896_s11, [#allocation3]  }
 0x4fc   :  { %629 = dma.done.wait [#allocation3], 32  }
 0x4fd   :  { %630 = vsyncadd [#allocation3], 4294967264 }
 0x4fe   :  { %486 = vsyncpa [#allocation3], 1 }
 0x4ff   :  { %487 = vsyncpa [#allocation4], 1 }

</bundles_post_ra>
